<compile_context>
chip_gen: v7x
topology: tpu7x:2x2x1
jax: 0.10.0
libtpu: 0.0.40
codegen_flags: <defaults>
</compile_context>

<pallas_src>
import math

import jax
import jax.numpy as jnp
from jax.experimental import pallas as pl
from jax.experimental.pallas import tpu as pltpu

_TARGET_BLOCK_BYTES = 4 * 1024 * 1024   # ~4 MiB per block (85%+ of copy roofline)
_VMEM_LIMIT_BYTES = 48 * 1024 * 1024    # headroom, still < v7x 64 MiB physical VMEM


def _copy_kernel(x_ref, o_ref):
    # Pure VMEM load/store pass-through (memory-bound copy).
    o_ref[...] = x_ref[...]


def _pick_lane_width(total_elems: int) -> int:
    """Largest lane-dense width (multiple of 128) that divides the tensor."""
    for lane in (4096, 2048, 1024, 512, 256, 128):
        if total_elems % lane == 0:
            return lane
    return 0  # no clean lane-dense reshape possible


def _round_down(x: int, m: int) -> int:
    return (x // m) * m


def _round_up(x: int, m: int) -> int:
    return -(-x // m) * m


def _block_dims(rows: int, cols: int, itemsize: int):
    """Byte-targeted, dtype-aware block sizing for the 2-D copy."""
    # Sublane packing factor: 8 rows f32, 16 bf16, 32 int8/fp8.
    sub = 8 * max(1, 4 // itemsize)

    # Column block: full width when it fits the byte budget at minimal rows,
    # otherwise a multiple of 128 lanes (ragged tail handled by the cdiv grid).
    max_col_by_budget = max(128, _round_down(_TARGET_BLOCK_BYTES // (sub * itemsize), 128))
    col_block = cols if cols <= max_col_by_budget else max_col_by_budget

    # Row block: fill the byte budget, rounded to the sublane packing.
    row_block = _TARGET_BLOCK_BYTES // max(1, col_block * itemsize)
    if row_block >= rows:
        row_block = rows
    else:
        row_block = max(sub, _round_down(row_block, sub))

    # v7x megacore: prefer >=2 row blocks when the slab is big enough (>1 MiB),
    # so both TensorCores get their own DMA pipeline.  No-op on v5e/v6e.
    if (row_block == rows and rows >= 2 * sub
            and rows * col_block * itemsize > (1 << 20)):
        half = _round_up((rows + 1) // 2, sub)
        if half < rows:
            row_block = half

    return row_block, col_block


def _pallas_copy_2d(x2d: jax.Array) -> jax.Array:
    rows, cols = x2d.shape
    itemsize = jnp.dtype(x2d.dtype).itemsize
    row_block, col_block = _block_dims(rows, cols, itemsize)
    grid = (pl.cdiv(rows, row_block), pl.cdiv(cols, col_block))

    return pl.pallas_call(
        _copy_kernel,
        out_shape=jax.ShapeDtypeStruct((rows, cols), x2d.dtype),
        grid_spec=pl.GridSpec(
            grid=grid,
            in_specs=[pl.BlockSpec((row_block, col_block), lambda i, j: (i, j))],
            out_specs=pl.BlockSpec((row_block, col_block), lambda i, j: (i, j)),
        ),
        compiler_params=pltpu.CompilerParams(
            dimension_semantics=("parallel", "parallel"),
            vmem_limit_bytes=_VMEM_LIMIT_BYTES,
        ),
    )(x2d)


def base_backbone_forward(x: jax.Array, copy_output: bool = False) -> jax.Array:
    """Identity forward of the (abstract) BaseBackbone.

    Default path is a true no-op (zero bytes of HBM traffic): the input is
    returned as-is.  Set `copy_output=True` to force a fresh output buffer,
    produced by a lane-dense, byte-budgeted Pallas copy kernel.
    """
    if not copy_output:
        # Fastest identity: no pallas_call, no DMA traffic at all.
        return x

    orig_shape = x.shape
    total = math.prod(orig_shape) if orig_shape else 1
    if total == 0:
        return x

    lane = _pick_lane_width(total)
    if lane > 0:
        # Lane-dense slab: full-width unmasked stores (multiple of 128 lanes).
        x2d = x.reshape(total // lane, lane)
    else:
        # Fallback: native last dim as lanes; columns are tiled inside
        # _pallas_copy_2d so wide last dims never exceed the VMEM budget.
        last = orig_shape[-1] if orig_shape else 1
        x2d = x.reshape(total // last, last)

    out2d = _pallas_copy_2d(x2d)
    return out2d.reshape(orig_shape)


if __name__ == "__main__":
    key = jax.random.PRNGKey(0)
    # Small NCHW input consistent with a backbone's expected image tensor.
    x = jax.random.normal(key, (2, 4, 16, 16), dtype=jnp.float32)

    # Default path: semantic no-op, zero bytes moved.
    y_fast = jax.block_until_ready(base_backbone_forward(x))

    # Explicit-copy path: exercises the Pallas copy kernel once on TPU.
    y_copy = jax.block_until_ready(base_backbone_forward(x, copy_output=True))

    assert y_fast.shape == x.shape and y_fast.dtype == x.dtype
    assert y_copy.shape == x.shape and y_copy.dtype == x.dtype
    assert bool(jnp.array_equal(y_fast, x))
    assert bool(jnp.array_equal(y_copy, x))
    print("KERNEL_OK")
</pallas_src>

<mosaic_0001>
module attributes {stable_mosaic.version = 11 : i64} {
  func.func @_copy_kernel(%arg0: i32, %arg1: i32, %arg2: memref<1x2048xf32, #tpu.memory_space<vmem>>, %arg3: memref<1x2048xf32, #tpu.memory_space<vmem>>) attributes {dimension_semantics = [#tpu.dimension_semantics<parallel>, #tpu.dimension_semantics<parallel>], iteration_bounds = array<i64: 1, 1>, scalar_prefetch = 0 : i64, scratch_operands = 0 : i64, tpu.core_type = #tpu.core_type<tc>, window_params = [{transform_indices = @transform_0, window_bounds = array<i64: 1, 2048>}, {transform_indices = @transform_1, window_bounds = array<i64: 1, 2048>}]} {
    %c0 = arith.constant 0 : index
    %c0_0 = arith.constant 0 : index
    %0 = vector.load %arg2[%c0, %c0_0] : memref<1x2048xf32, #tpu.memory_space<vmem>>, vector<1x2048xf32>
    %c0_1 = arith.constant 0 : index
    %c0_2 = arith.constant 0 : index
    %1 = vector.load %arg3[%c0_1, %c0_2] : memref<1x2048xf32, #tpu.memory_space<vmem>>, vector<1x2048xf32>
    tpu.vector_store %arg3[%c0_1, %c0_2], %0 {strides = array<i32>} : memref<1x2048xf32, #tpu.memory_space<vmem>>, vector<1x2048xf32>,
    return
  }
  func.func @transform_0(%arg0: i32, %arg1: i32) -> (i32, i32) {
    %c0_i32 = arith.constant 0 : i32
    return %arg0, %arg1 : i32, i32
  }
  func.func @transform_1(%arg0: i32, %arg1: i32) -> (i32, i32) {
    %c0_i32 = arith.constant 0 : i32
    return %arg0, %arg1 : i32, i32
  }
}

</mosaic_0001>

<bundles_post_ra>
// kernel: tpu_custom_call.1
= control target key start
LH: loop header
LB: loop body
LE: loop exit
PB: predicated region body
PF: predicated region fallthrough
CT: control target
= control target key end

     0   :  { %6 = vsyncpa [#allocation3], 0  ;;  %s126_s0 = inlined_call_operand.hbm [shape: f32[1,2048], index: 0, kind: input, shape index: {}]   ;;  %s127_s1 = inlined_call_operand.hbm [shape: f32[1,2048], index: 1, kind: output, shape index: {}]  }
   0x1   :  { %7 = vsyncpa [#allocation4], 0  ;;  %s90_s6 = smov [#allocation2]   ;;  %s42_s10 = scalar_lea.hbm %s126_s0, 256 }
   0x2   :  { %s14_s7 = sshll.u32 %s90_s6, 4  ;;  %p43_p0 = scmp.ne.s32.totalorder %s126_s0, %s42_s10  ;;  %s15_s7 = int_to_ptr.vmem [resolvable:$true] %s14_s7 }
   0x3   :  { %p46_p1 = scmp.lt.u32.totalorder %s42_s10, %s126_s0 }
   0x5   :  { %p48_p2 = pnand %p46_p1, %p43_p0 }
   0x7   :  { %51 = shalt.err (!%p48_p2)
}
   0x8   :  { %s52_s15 = scalar_lea.vmem %s15_s7, 256  ;;  %p57_p4 = scmp.lt.s32.totalorder %s15_s7, %s15_s7 }
   0x9   :  { %p53_p3 = scmp.ne.s32.totalorder %s15_s7, %s52_s15  ;;  %p58_p5 = scmp.lt.s32.totalorder %s52_s15, %s52_s15 }
   0xb   :  { %p59_p6 = por %p58_p5, %p57_p4 }
   0xd   :  { %p60_p7 = pnand %p59_p6, %p53_p3 }
   0xf   :  { %63 = shalt.err (!%p60_p7)
}
  0x10   :  { %17 = dma.hbm_to_vmem [thread:$0]  %s126_s0, 256, %s15_s7, [#allocation3]  }
  0x11   :  { %86 = dma.done.wait [#allocation3], 256  }
  0x12   :  { %87 = vsyncadd [#allocation3], 4294967040  ;;  %s91_s18 = smov [#allocation5]   ;;  %v21_v0 = vld [vmem:[#allocation2] sm:$0xff]  ;;  %v22_v1 = vld [vmem:[#allocation2 + $0x8] sm:$0xff] }
  0x13   :  { %s31_s19 = sshll.u32 %s91_s18, 4  ;;  %23 = vst [vmem:[#allocation5] sm:$0xff] %v21_v0  ;;  %24 = vst [vmem:[#allocation5 + $0x8] sm:$0xff] %v22_v1  ;;  %s32_s19 = int_to_ptr.vmem [resolvable:$true] %s31_s19 }
  0x14   :  { %s64_s20 = scalar_lea.vmem %s32_s19, 256  ;;  %p69_p9 = scmp.lt.s32.totalorder %s32_s19, %s32_s19 }
  0x15   :  { %p65_p8 = scmp.ne.s32.totalorder %s32_s19, %s64_s20  ;;  %p70_p10 = scmp.lt.s32.totalorder %s64_s20, %s64_s20 }
  0x17   :  { %p71_p11 = por %p70_p10, %p69_p9 }
  0x19   :  { %p72_p12 = pnand %p71_p11, %p65_p8 }
  0x1b   :  { %75 = shalt.err (!%p72_p12)
}
  0x1c   :  { %s76_s0 = scalar_lea.hbm %s127_s1, 256 }
  0x1d   :  { %p77_p13 = scmp.ne.s32.totalorder %s127_s1, %s76_s0  ;;  %p80_p0 = scmp.lt.u32.totalorder %s76_s0, %s127_s1 }
  0x1f   :  { %p82_p1 = pnand %p80_p0, %p77_p13 }
  0x21   :  { %85 = shalt.err (!%p82_p1)
}
  0x22   :  { %34 = dma.vmem_to_hbm [thread:$0]  %s32_s19, 256, %s127_s1, [#allocation4]  }
  0x23   :  { %88 = dma.done.wait [#allocation4], 256  }
  0x24   :  { %89 = vsyncadd [#allocation4], 4294967040 }
  0x25   :  { %38 = vsyncpa [#allocation3], 1 }
  0x26   :  { %39 = vsyncpa [#allocation4], 1 }

</bundles_post_ra>
